<compile_context>
chip_gen: v6e
topology: v6e:2x2x1
jax: 0.10.0
libtpu: 0.0.40
codegen_flags: <defaults>
</compile_context>

<pallas_src>
import functools
import math

import jax
import jax.numpy as jnp
from jax.experimental import pallas as pl
from jax.experimental.pallas import tpu as pltpu


def get_embedding(num_embeddings: int, embedding_dim: int, padding_idx=None):
    """JAX port of SinusoidalPositionalEmbedding.get_embedding (reference only)."""
    half_dim = embedding_dim // 2
    scale = math.log(10000.0) / (half_dim - 1)
    inv_freq = jnp.exp(jnp.arange(half_dim, dtype=jnp.float32) * -scale)       # (half,)
    ang = jnp.arange(num_embeddings, dtype=jnp.float32)[:, None] * inv_freq[None, :]
    emb = jnp.concatenate([jnp.sin(ang), jnp.cos(ang)], axis=1)                 # (V, 2*half)
    emb = emb.reshape(num_embeddings, -1)
    if embedding_dim % 2 == 1:
        emb = jnp.concatenate([emb, jnp.zeros((num_embeddings, 1), jnp.float32)], axis=1)
    if padding_idx is not None:
        emb = emb.at[padding_idx].set(0.0)
    return emb


def _sincos(x):
    """sin(x) and cos(x) with ONE shared range reduction (f32, x >= 0 here).

    q = round(x * 2/pi); r = x - q*pi/2 via 3-term Cody-Waite split; Cephes
    degree-7/6 polynomials on |r| <= pi/4; quadrant rotation selects outputs.
    Error ~1e-7 for the bounded angles used here (|x| <= padding_idx + S).
    Both results share the reduction, ~halving VALU work vs jnp.sin + jnp.cos.
    """
    TWO_OVER_PI = 0.63661977236758134308
    PIO2_A = 1.5703125                       # pi/2 split into 3 short-mantissa parts
    PIO2_B = 4.837512969970703125e-4
    PIO2_C = 7.54978995489188216e-8

    q = jnp.floor(x * TWO_OVER_PI + 0.5)
    r = x - q * PIO2_A
    r = r - q * PIO2_B
    r = r - q * PIO2_C

    r2 = r * r
    sin_r = r + r * r2 * (-1.6666654611e-1
                          + r2 * (8.3321608736e-3 + r2 * (-1.9515295891e-4)))
    cos_r = 1.0 - 0.5 * r2 + r2 * r2 * (4.166664568298827e-2
                          + r2 * (-1.388731625493765e-3 + r2 * 2.443315711809948e-5))

    qi = q.astype(jnp.int32) & 3
    sin_x = jnp.where(qi == 0, sin_r,
            jnp.where(qi == 1, cos_r,
            jnp.where(qi == 2, -sin_r, -cos_r)))
    cos_x = jnp.where(qi == 0, cos_r,
            jnp.where(qi == 1, -sin_r,
            jnp.where(qi == 2, -cos_r, sin_r)))
    return sin_x, cos_x


def _sinusoidal_pe_kernel(pos_ref, inv_freq_ref, out_ref, *,
                          padding_idx: int, seq_tile: int, half: int,
                          embedding_dim: int):
    pos = pos_ref[...].reshape(seq_tile, 1)                   # (TS, 1) int32
    keep = pos != padding_idx                                 # padding rows -> 0
    angle = pos.astype(jnp.float32) * inv_freq_ref[...]       # (TS, half)
    sin_x, cos_x = _sincos(angle)

    odtype = out_ref.dtype
    sin_x = jnp.where(keep, sin_x, 0.0).astype(odtype)
    cos_x = jnp.where(keep, cos_x, 0.0).astype(odtype)

    if half % 128 == 0:
        # Lane-aligned direct half stores; no (TS, D) concat materialization.
        out_ref[0, :, :half] = sin_x
        out_ref[0, :, half:2 * half] = cos_x
        if embedding_dim % 2 == 1:
            out_ref[0, :, 2 * half:] = jnp.zeros((seq_tile, 1), odtype)
    else:
        # Small / unaligned D: single full-block store (toy shapes only).
        pieces = [sin_x, cos_x]
        if embedding_dim % 2 == 1:
            pieces.append(jnp.zeros((seq_tile, 1), odtype))
        emb = jnp.concatenate(pieces, axis=1)                 # (TS, D)
        out_ref[...] = emb.reshape(out_ref.shape)


def _pick_seq_tile(seq_len: int, embedding_dim: int) -> int:
    """Target a few MiB of f32 output per grid step to amortize step overhead."""
    if seq_len <= 1024:
        return seq_len
    for ts in (2048, 1024, 512, 256, 128):
        if seq_len % ts == 0 and ts * embedding_dim * 4 <= 4 * 1024 * 1024:
            return ts
    return seq_len


def sinusoidal_positional_embedding(tokens, embedding_dim: int, padding_idx: int,
                                    seq_tile=None, out_dtype=jnp.float32):
    """tokens: (B, S) int -> (B, S, D) sinusoidal positional embeddings."""
    B, S = tokens.shape
    D = int(embedding_dim)
    assert D >= 4, "embedding_dim must be >= 4 (half_dim - 1 == 0 otherwise)"
    half = D // 2

    ts = _pick_seq_tile(S, D) if seq_tile is None else int(seq_tile)
    assert S % ts == 0 and (ts == S or ts % 8 == 0), "seq_tile must divide S (mult of 8)"
    n_s = S // ts

    # make_positions (max_pos_train == 0, external_qkv=False, non-incremental):
    # pos = cumsum(tok != pad) * mask + pad ; pos[:, 0] = pad + 1
    tok = tokens.astype(jnp.int32)
    mask = (tok != padding_idx).astype(jnp.int32)
    pos = jnp.cumsum(mask, axis=1) * mask + padding_idx
    pos = pos.at[:, 0].set(padding_idx + 1)
    pos3 = pos.reshape(B, S, 1)

    # Same inv_freq values as get_embedding (exact f32 match with the table).
    scale = math.log(10000.0) / (half - 1)
    inv_freq = jnp.exp(jnp.arange(half, dtype=jnp.float32) * -scale).reshape(1, half)

    kernel = functools.partial(_sinusoidal_pe_kernel, padding_idx=int(padding_idx),
                               seq_tile=ts, half=half, embedding_dim=D)
    out_bytes = B * S * D * int(jnp.dtype(out_dtype).itemsize)
    cost = pl.CostEstimate(flops=B * S * half * 40, transcendentals=0,
                           bytes_accessed=out_bytes + B * S * 4 + half * 4)

    return pl.pallas_call(
        kernel,
        out_shape=jax.ShapeDtypeStruct((B, S, D), out_dtype),
        grid=(B, n_s),
        in_specs=[
            pl.BlockSpec((1, ts, 1), lambda b, s: (b, s, 0)),     # position tile
            pl.BlockSpec((1, half), lambda b, s: (0, 0)),         # inv_freq (resident)
        ],
        out_specs=pl.BlockSpec((1, ts, D), lambda b, s: (b, s, 0)),
        compiler_params=pltpu.CompilerParams(
            dimension_semantics=("parallel", "parallel"),
            vmem_limit_bytes=32 * 1024 * 1024),
        cost_estimate=cost,
    )(pos3, inv_freq)


def reference_forward(tokens, weights, padding_idx: int):
    """Pure-JAX reference of the PyTorch forward (table gather)."""
    mask = (tokens != padding_idx).astype(jnp.int32)
    pos = jnp.cumsum(mask, axis=1)                    # max_pos_train == 0 branch
    pos = pos * mask + padding_idx
    pos = pos.at[:, 0].set(padding_idx + 1)
    return weights[pos.reshape(-1)].reshape(tokens.shape[0], tokens.shape[1], -1)


if __name__ == "__main__":
    # TODO(synk): incremental_state / timestep decode path and the ONNX-trace
    # branch are host-side control flow and are not implemented in the kernel.
    padding_idx = 1
    init_size = 1024
    key = jax.random.PRNGKey(0)

    # Test 1: small shape, single seq tile, small D (concat store path).
    B, S, D = 2, 8, 32
    tokens = jax.random.randint(key, (B, S), 0, 5, dtype=jnp.int32)
    weights = get_embedding(max(init_size, padding_idx + 1 + S), D, padding_idx)
    out = jax.block_until_ready(sinusoidal_positional_embedding(tokens, D, padding_idx))
    ref = reference_forward(tokens, weights, padding_idx)
    assert out.shape == (B, S, D)
    assert jnp.allclose(out, ref, atol=1e-4, rtol=1e-5), "mismatch vs reference (test 1)"

    # Test 2: multiple seq tiles (S=16 split into tiles of 8), positions from wrapper.
    B2, S2, D2 = 2, 16, 32
    tokens2 = jax.random.randint(jax.random.PRNGKey(1), (B2, S2), 0, 4, dtype=jnp.int32)
    weights2 = get_embedding(max(init_size, padding_idx + 1 + S2), D2, padding_idx)
    out2 = jax.block_until_ready(
        sinusoidal_positional_embedding(tokens2, D2, padding_idx, seq_tile=8))
    ref2 = reference_forward(tokens2, weights2, padding_idx)
    assert out2.shape == (B2, S2, D2)
    assert jnp.allclose(out2, ref2, atol=1e-4, rtol=1e-5), "mismatch vs reference (test 2)"

    # Test 3: lane-aligned half (D=256, half=128) -> direct half-store path.
    B3, S3, D3 = 2, 8, 256
    tokens3 = jax.random.randint(jax.random.PRNGKey(2), (B3, S3), 0, 5, dtype=jnp.int32)
    weights3 = get_embedding(max(init_size, padding_idx + 1 + S3), D3, padding_idx)
    out3 = jax.block_until_ready(sinusoidal_positional_embedding(tokens3, D3, padding_idx))
    ref3 = reference_forward(tokens3, weights3, padding_idx)
    assert out3.shape == (B3, S3, D3)
    assert jnp.allclose(out3, ref3, atol=1e-4, rtol=1e-5), "mismatch vs reference (test 3)"

    print("KERNEL_OK")
</pallas_src>

<mosaic_0001>
module attributes {stable_mosaic.version = 11 : i64} {
  func.func @_sinusoidal_pe_kernel(%arg0: i32, %arg1: i32, %arg2: memref<1x8x1xi32, #tpu.memory_space<vmem>>, %arg3: memref<1x16xf32, #tpu.memory_space<vmem>>, %arg4: memref<1x8x32xf32, #tpu.memory_space<vmem>>) attributes {dimension_semantics = [#tpu.dimension_semantics<parallel>, #tpu.dimension_semantics<parallel>], iteration_bounds = array<i64: 2, 1>, scalar_prefetch = 0 : i64, scratch_operands = 0 : i64, tpu.core_type = #tpu.core_type<tc>, window_params = [{transform_indices = @transform_0, window_bounds = array<i64: 1, 8, 1>}, {pipeline_mode = #tpu.pipeline_mode<synchronous>, transform_indices = @transform_1, window_bounds = array<i64: 1, 16>}, {transform_indices = @transform_2, window_bounds = array<i64: 1, 8, 32>}]} {
    %c0 = arith.constant 0 : index
    %c0_0 = arith.constant 0 : index
    %c0_1 = arith.constant 0 : index
    %0 = vector.load %arg2[%c0, %c0_0, %c0_1] : memref<1x8x1xi32, #tpu.memory_space<vmem>>, vector<1x8x1xi32>
    %1 = vector.shape_cast %0 : vector<1x8x1xi32> to vector<8x1xi32>
    %c1_i32 = arith.constant 1 : i32
    %2 = vector.broadcast %c1_i32 : i32 to vector<8x1xi32>
    %3 = arith.cmpi ne, %1, %2 : vector<8x1xi32>
    %4 = arith.sitofp %1 : vector<8x1xi32> to vector<8x1xf32>
    %c0_2 = arith.constant 0 : index
    %c0_3 = arith.constant 0 : index
    %5 = vector.load %arg3[%c0_2, %c0_3] : memref<1x16xf32, #tpu.memory_space<vmem>>, vector<1x16xf32>
    %6 = vector.broadcast %4 : vector<8x1xf32> to vector<8x16xf32>
    %7 = vector.broadcast %5 : vector<1x16xf32> to vector<8x16xf32>
    %8 = arith.mulf %6, %7 : vector<8x16xf32>
    %cst = arith.constant 0.636619746 : f32
    %9 = vector.broadcast %cst : f32 to vector<8x16xf32>
    %10 = arith.mulf %8, %9 : vector<8x16xf32>
    %cst_4 = arith.constant 5.000000e-01 : f32
    %11 = vector.broadcast %cst_4 : f32 to vector<8x16xf32>
    %12 = arith.addf %10, %11 : vector<8x16xf32>
    %13 = math.floor %12 : vector<8x16xf32>
    %cst_5 = arith.constant 1.5703125 : f32
    %14 = vector.broadcast %cst_5 : f32 to vector<8x16xf32>
    %15 = arith.mulf %13, %14 : vector<8x16xf32>
    %16 = arith.subf %8, %15 : vector<8x16xf32>
    %cst_6 = arith.constant 4.83751297E-4 : f32
    %17 = vector.broadcast %cst_6 : f32 to vector<8x16xf32>
    %18 = arith.mulf %13, %17 : vector<8x16xf32>
    %19 = arith.subf %16, %18 : vector<8x16xf32>
    %cst_7 = arith.constant 7.549790e-08 : f32
    %20 = vector.broadcast %cst_7 : f32 to vector<8x16xf32>
    %21 = arith.mulf %13, %20 : vector<8x16xf32>
    %22 = arith.subf %19, %21 : vector<8x16xf32>
    %23 = arith.mulf %22, %22 : vector<8x16xf32>
    %24 = arith.mulf %22, %23 : vector<8x16xf32>
    %cst_8 = arith.constant -1.95152956E-4 : f32
    %25 = vector.broadcast %cst_8 : f32 to vector<8x16xf32>
    %26 = arith.mulf %23, %25 : vector<8x16xf32>
    %cst_9 = arith.constant 0.00833216123 : f32
    %27 = vector.broadcast %cst_9 : f32 to vector<8x16xf32>
    %28 = arith.addf %27, %26 : vector<8x16xf32>
    %29 = arith.mulf %23, %28 : vector<8x16xf32>
    %cst_10 = arith.constant -0.166666552 : f32
    %30 = vector.broadcast %cst_10 : f32 to vector<8x16xf32>
    %31 = arith.addf %30, %29 : vector<8x16xf32>
    %32 = arith.mulf %24, %31 : vector<8x16xf32>
    %33 = arith.addf %22, %32 : vector<8x16xf32>
    %cst_11 = arith.constant 5.000000e-01 : f32
    %34 = vector.broadcast %cst_11 : f32 to vector<8x16xf32>
    %35 = arith.mulf %34, %23 : vector<8x16xf32>
    %cst_12 = arith.constant 1.000000e+00 : f32
    %36 = vector.broadcast %cst_12 : f32 to vector<8x16xf32>
    %37 = arith.subf %36, %35 : vector<8x16xf32>
    %38 = arith.mulf %23, %23 : vector<8x16xf32>
    %cst_13 = arith.constant 2.44331568E-5 : f32
    %39 = vector.broadcast %cst_13 : f32 to vector<8x16xf32>
    %40 = arith.mulf %23, %39 : vector<8x16xf32>
    %cst_14 = arith.constant -0.00138873165 : f32
    %41 = vector.broadcast %cst_14 : f32 to vector<8x16xf32>
    %42 = arith.addf %41, %40 : vector<8x16xf32>
    %43 = arith.mulf %23, %42 : vector<8x16xf32>
    %cst_15 = arith.constant 0.0416666456 : f32
    %44 = vector.broadcast %cst_15 : f32 to vector<8x16xf32>
    %45 = arith.addf %44, %43 : vector<8x16xf32>
    %46 = arith.mulf %38, %45 : vector<8x16xf32>
    %47 = arith.addf %37, %46 : vector<8x16xf32>
    %48 = arith.fptosi %13 : vector<8x16xf32> to vector<8x16xi32>
    %c3_i32 = arith.constant 3 : i32
    %49 = vector.broadcast %c3_i32 : i32 to vector<8x16xi32>
    %50 = arith.andi %48, %49 : vector<8x16xi32>
    %c0_i32 = arith.constant 0 : i32
    %51 = vector.broadcast %c0_i32 : i32 to vector<8x16xi32>
    %52 = arith.cmpi eq, %50, %51 : vector<8x16xi32>
    %c1_i32_16 = arith.constant 1 : i32
    %53 = vector.broadcast %c1_i32_16 : i32 to vector<8x16xi32>
    %54 = arith.cmpi eq, %50, %53 : vector<8x16xi32>
    %c2_i32 = arith.constant 2 : i32
    %55 = vector.broadcast %c2_i32 : i32 to vector<8x16xi32>
    %56 = arith.cmpi eq, %50, %55 : vector<8x16xi32>
    %cst_17 = arith.constant 0.000000e+00 : f32
    %57 = vector.broadcast %cst_17 : f32 to vector<8x16xf32>
    %58 = arith.subf %57, %33 : vector<8x16xf32>
    %cst_18 = arith.constant 0.000000e+00 : f32
    %59 = vector.broadcast %cst_18 : f32 to vector<8x16xf32>
    %60 = arith.subf %59, %47 : vector<8x16xf32>
    %61 = arith.select %56, %58, %60 : vector<8x16xi1>, vector<8x16xf32>
    %62 = arith.select %54, %47, %61 : vector<8x16xi1>, vector<8x16xf32>
    %63 = arith.select %52, %33, %62 : vector<8x16xi1>, vector<8x16xf32>
    %c0_i32_19 = arith.constant 0 : i32
    %64 = vector.broadcast %c0_i32_19 : i32 to vector<8x16xi32>
    %65 = arith.cmpi eq, %50, %64 : vector<8x16xi32>
    %c1_i32_20 = arith.constant 1 : i32
    %66 = vector.broadcast %c1_i32_20 : i32 to vector<8x16xi32>
    %67 = arith.cmpi eq, %50, %66 : vector<8x16xi32>
    %cst_21 = arith.constant 0.000000e+00 : f32
    %68 = vector.broadcast %cst_21 : f32 to vector<8x16xf32>
    %69 = arith.subf %68, %33 : vector<8x16xf32>
    %c2_i32_22 = arith.constant 2 : i32
    %70 = vector.broadcast %c2_i32_22 : i32 to vector<8x16xi32>
    %71 = arith.cmpi eq, %50, %70 : vector<8x16xi32>
    %cst_23 = arith.constant 0.000000e+00 : f32
    %72 = vector.broadcast %cst_23 : f32 to vector<8x16xf32>
    %73 = arith.subf %72, %47 : vector<8x16xf32>
    %74 = arith.select %71, %73, %33 : vector<8x16xi1>, vector<8x16xf32>
    %75 = arith.select %67, %69, %74 : vector<8x16xi1>, vector<8x16xf32>
    %76 = arith.select %65, %47, %75 : vector<8x16xi1>, vector<8x16xf32>
    %cst_24 = arith.constant 0.000000e+00 : f32
    %77 = vector.shape_cast %3 : vector<8x1xi1> to vector<8x1xi1>
    %78 = vector.broadcast %77 : vector<8x1xi1> to vector<8x16xi1>
    %79 = vector.broadcast %cst_24 : f32 to vector<8x16xf32>
    %80 = arith.select %78, %63, %79 : vector<8x16xi1>, vector<8x16xf32>
    %cst_25 = arith.constant 0.000000e+00 : f32
    %81 = vector.shape_cast %3 : vector<8x1xi1> to vector<8x1xi1>
    %82 = vector.broadcast %81 : vector<8x1xi1> to vector<8x16xi1>
    %83 = vector.broadcast %cst_25 : f32 to vector<8x16xf32>
    %84 = arith.select %82, %76, %83 : vector<8x16xi1>, vector<8x16xf32>
    %85 = tpu.concatenate %80, %84 in 1 : vector<8x16xf32>, vector<8x16xf32> -> vector<8x32xf32>
    %86 = vector.shape_cast %85 : vector<8x32xf32> to vector<1x8x32xf32>
    %c0_26 = arith.constant 0 : index
    %c0_27 = arith.constant 0 : index
    %c0_28 = arith.constant 0 : index
    %87 = vector.load %arg4[%c0_26, %c0_27, %c0_28] : memref<1x8x32xf32, #tpu.memory_space<vmem>>, vector<1x8x32xf32>
    tpu.vector_store %arg4[%c0_26, %c0_27, %c0_28], %86 {strides = array<i32>} : memref<1x8x32xf32, #tpu.memory_space<vmem>>, vector<1x8x32xf32>,
    return
  }
  func.func @transform_0(%arg0: i32, %arg1: i32) -> (i32, i32, i32) {
    %c0_i32 = arith.constant 0 : i32
    %c0_i32_0 = arith.constant 0 : i32
    return %arg0, %arg1, %c0_i32 : i32, i32, i32
  }
  func.func @transform_1(%arg0: i32, %arg1: i32) -> (i32, i32) {
    %c0_i32 = arith.constant 0 : i32
    %c0_i32_0 = arith.constant 0 : i32
    %c0_i32_1 = arith.constant 0 : i32
    return %c0_i32, %c0_i32_0 : i32, i32
  }
  func.func @transform_2(%arg0: i32, %arg1: i32) -> (i32, i32, i32) {
    %c0_i32 = arith.constant 0 : i32
    %c0_i32_0 = arith.constant 0 : i32
    return %arg0, %arg1, %c0_i32 : i32, i32, i32
  }
}

</mosaic_0001>

<bundles_post_ra>
// kernel: tpu_custom_call.1
= control target key start
LH: loop header
LB: loop body
LE: loop exit
PB: predicated region body
PF: predicated region fallthrough
CT: control target
= control target key end

     0   :  { %7 = vsyncpa [#allocation3], 0  ;;  %s596_s0 = inlined_call_operand.vmem [shape: s32[2,8,1], index: 0, kind: input, shape index: {}]   ;;  %s597_s1 = inlined_call_operand.vmem [shape: f32[1,16], index: 1, kind: input, shape index: {}]   ;;  %s598_s2 = inlined_call_operand.hbm [shape: f32[2,8,32], index: 2, kind: output, shape index: {}]  }
   0x1   :  { %9 = vsyncpa [#allocation3 + $0x1], 0  ;;  %s488_s9 = smov 0   ;;  %s490_s10 = smov 0  }
   0x2   :  { %s492_s11 = smov 0   ;;  %s494_s12 = smov 0  }
   0x3   :  { %s496_s13 = smov 0   ;;  %s498_s14 = smov 0  }
   0x4 LB: > { %s320_s15 = sadd.s32 4294967295, %s468_s14   ;;  %s321_s16 = sadd.s32 4294967294, %s468_s14   ;;  %s468_s14 = sphi %s498_s14, %s15_s14   ;;  %s464_s13 = sphi %s496_s13, %s605_s13   ;;  %s460_s12 = sphi %s494_s12, %s604_s12   ;;  %s456_s11 = sphi %s492_s11, %s603_s11   ;;  %s452_s10 = sphi %s490_s10, %s602_s10   ;;  %s448_s9 = sphi %s488_s9, %s601_s9  }
   0x5   : > { %s27_s17 = sadd.s32 1, %s464_s13  ;;  %s85_s18 = sadd.s32 1, %s456_s11 }
   0x6   : > { %p29_p0 = scmp.ge.s32.totalorder %s27_s17, 2  ;;  %p95_p1 = scmp.ne.s32.totalorder %s456_s11, %s452_s10 }
   0x7   : > { %p96_p2 = scmp.eq.s32.totalorder %s320_s15, 1  ;;  %p101_p3 = scmp.ne.s32.totalorder %s452_s10, %s448_s9 }
   0x8   : > { %s607_s17 = smov (%p29_p0, %s27_s17), 0  ;;  %p102_p5 = scmp.eq.s32.totalorder %s321_s16, 1 }
   0x9   : > { %p528_p4 = por %p96_p2, %p95_p1  ;;  %s80_s20 = ssub.s32 %s464_s13, %s607_s17 }
   0xa   : > { %p324_p6 = scmp.ge.s32.totalorder %s468_s14, 1  ;;  %p83_p7 = scmp.eq.s32.totalorder %s80_s20, 0 }
   0xb   : > { %p535_p8 = por %p102_p5, %p101_p3  ;;  %p133_p9 = scmp.lt.s32.totalorder %s468_s14, 3 }
   0xc   : > { %s541_s22 = scalar_select %p83_p7, %s456_s11, %s85_s18  }
   0xd   : > { %p134_p10 = pnand %p324_p6, %p133_p9 }
   0xe   : > { %p157_p11 = scmp.lt.s32.totalorder (!%p134_p10), %s460_s12, 1  ;;  %s471_s30 = smov (!%p134_p10), 16  }
   0xf   : > { %137 = sbr.rel (%p134_p10) target bundleno = 316 (0x13c), region = 28  ;;  %s154_s3 = sand.u32 (!%p134_p10), 1, %s452_s10  }
  0x10   : > { %s325_s4 = sshll.u32 (!%p134_p10), %s154_s3, 3  ;;  %s329_s5 = sshll.u32 (!%p134_p10), %s460_s12, 7 }
  0x11   : > { %s156_s6 = scalar_lea.vmem (!%p134_p10), [#allocation2], %s325_s4  ;;  %s556_s16 = scalar_lea.hbm (!%p134_p10), %s598_s2, %s329_s5 }
  0x12   : > { %s249_s7 = sshll.u32 (!%p134_p10), %s156_s6, 4  ;;  %s235_s18 = scalar_lea.sflag (!%p134_p10), [#allocation3], %s154_s3  ;;  %s250_s7 = int_to_ptr.vmem [resolvable:$true] %s249_s7 }
  0x13   : > { %s392_s20 = scalar_lea.vmem (!%p134_p10), %s250_s7, 128 }
  0x14   : > { %v470_v0 = vmov 0   ;;  %s158_s23 = scalar_select %p157_p11, %s460_s12, 1  ;;  %v327_v4 = vld [vmem:[%s597_s1] ss:$0 sm:$0xff]  ;;  %vm230_vm5 = vcmask 130048   ;;  %vm232_vm6 = vcmask 261120  }
  0x15   : > { %391 = vset.pattern.permute.xlu0 %v470_v0  ;;  %p393_p12 = scmp.ne.s32.totalorder %s250_s7, %s392_s20  ;;  %s472_s12 = smov [#allocation2]  }
  0x16   : > { %s326_s24 = sshll.u32 %s158_s23, 3  ;;  %s396_s23 = sshll.u32 %s472_s12, 4  ;;  %s397_s23 = int_to_ptr.vmem [resolvable:$false] %s396_s23 }
  0x17   : > { %s163_s27 = scalar_lea.vmem %s596_s0, %s326_s24  ;;  %p394_p13 = pnand %p393_p12, %p528_p4 }
  0x18   : > { %v164_v1 = vld [vmem:[%s163_s27] sm:$0xff]  ;;  %s398_s24 = scalar_lea.vmem %s397_s23, 256  ;;  %p399_p1 = scmp.lt.s32.totalorder %s250_s7, %s397_s23 }
  0x19   : > { %vm165_vm0 = vcmp.ne.s32.totalorder %v164_v1, 1  ;;  %v166_v2 = vcvt.s32.f32 %v164_v1  ;;  %p395_p0 = pneg %p394_p13  ;;  %p400_p2 = scmp.lt.s32.totalorder %s398_s24, %s392_s20 }
  0x1a   : > { %v219_v3 = vsel %vm165_vm0, 1, %v470_v0 }
  0x1b   : > { %170 = vperm.xlu0 %391, %v166_v2   ;;  %p401_p3 = por %p400_p2, %p399_p1 }
  0x1d   : > { %p402_p5 = pnand %p401_p3, %p395_p0 }
  0x1f   : > { %221 = vperm.xlu0 %391, %v219_v3  }
  0x96   : > { %v171_v5 = vpop.permute.xlu0 %170 }
  0x97   : > { %v179_v6 = vmul.f32 %v327_v4, %v171_v5 }
  0x99   : > { %v180_v7 = vmul.f32 0.63661975, %v179_v6 }
  0x9a   : > { %v222_v38 = vpop.permute.xlu0 %221 }
  0x9b   : > { %v181_v8 = vadd.f32 0.5, %v180_v7  ;;  %vm223_vm4 = vcmp.eq.s32.totalorder %v222_v38, 1 }
  0x9d   : > { %v182_v9 = vfloor.f32 %v181_v8 }
  0x9f   : > { %v183_v10 = vmul.f32 1.5703125, %v182_v9  ;;  %v185_v12 = vmul.f32 0.0004837513, %v182_v9  ;;  %v187_v14 = vmul.f32 7.54979e-08, %v182_v9  ;;  %v332_v20 = vtrunc.f32 %v182_v9 }
  0xa1   : > { %v184_v11 = vsub.f32 %v179_v6, %v183_v10  ;;  %v333_v27 = vcvt.f32.s32 %v332_v20 }
  0xa3   : > { %v186_v13 = vsub.f32 %v184_v11, %v185_v12  ;;  %v207_v34 = vand.u32 3, %v333_v27 }
  0xa5   : > { %v188_v15 = vsub.f32 %v186_v13, %v187_v14  ;;  %vm210_vm1 = vcmp.eq.s32.totalorder %v207_v34, 2  ;;  %vm209_vm2 = vcmp.eq.s32.totalorder %v207_v34, 1  ;;  %vm208_vm3 = vcmp.eq.s32.totalorder %v207_v34, 0 }
  0xa7   : > { %v189_v16 = vmul.f32 %v188_v15, %v188_v15 }
  0xa9   : > { %v191_v17 = vmul.f32 -0.00019515296, %v189_v16  ;;  %v200_v18 = vmul.f32 2.4433157e-05, %v189_v16  ;;  %v197_v23 = vmul.f32 0.5, %v189_v16  ;;  %v190_v25 = vmul.f32 %v189_v16, %v188_v15 }
  0xaa   : > { %v199_v28 = vmul.f32 %v189_v16, %v189_v16 }
  0xab   : > { %v192_v19 = vadd.f32 0.008332161, %v191_v17  ;;  %v201_v21 = vadd.f32 -0.0013887316, %v200_v18  ;;  %v198_v31 = vsub.f32 1.0, %v197_v23 }
  0xad   : > { %v193_v22 = vmul.f32 %v192_v19, %v189_v16  ;;  %v202_v24 = vmul.f32 %v201_v21, %v189_v16 }
  0xaf   : > { %v194_v26 = vadd.f32 -0.16666655, %v193_v22  ;;  %v203_v29 = vadd.f32 0.041666646, %v202_v24 }
  0xb1   : > { %v195_v30 = vmul.f32 %v194_v26, %v190_v25  ;;  %v204_v32 = vmul.f32 %v203_v29, %v199_v28 }
  0xb3   : > { %v196_v33 = vadd.f32 %v195_v30, %v188_v15  ;;  %v205_v35 = vadd.f32 %v204_v32, %v198_v31 }
  0xb5   : > { %v211_v36 = vsub.f32 0.0, %v196_v33  ;;  %v212_v37 = vsub.f32 0.0, %v205_v35 }
  0xb7   : > { %v213_v39 = vsel %vm210_vm1, %v211_v36, %v212_v37  ;;  %v216_v40 = vsel %vm210_vm1, %v212_v37, %v196_v33 }
  0xb8   : > { %v214_v41 = vsel %vm209_vm2, %v205_v35, %v213_v39  ;;  %v217_v42 = vsel %vm209_vm2, %v211_v36, %v216_v40 }
  0xb9   : > { %v215_v43 = vsel %vm208_vm3, %v196_v33, %v214_v41  ;;  %v218_v44 = vsel %vm208_vm3, %v205_v35, %v217_v42 }
  0xba   : > { %v224_v45 = vsel %vm223_vm4, %v215_v43, 0.0  ;;  %v225_v46 = vsel %vm223_vm4, %v218_v44, 0.0 }
  0xbb   : > { %227 = vrot.lane.b32.xlu1 %v225_v46, %s471_s30 }
 0x12d   : > { %v228_v47 = vpop.permute.xlu1 %227 }
 0x12e   : > { %v231_v48 = vsel %vm230_vm5, %v224_v45, %v228_v47 }
 0x12f   : > { %233 = vst.msk [vmem:[%s156_s6] sm:$0xff] %vm232_vm6, %v231_v48 }
 0x130   : > { %405 = shalt.err (!%p402_p5)
}
 0x131   : > { %s406_s25 = scalar_lea.hbm %s556_s16, 128  ;;  %s410_s28 = scalar_lea.hbm %s598_s2, 256 }
 0x132   : > { %p407_p6 = scmp.ne.s32.totalorder %s556_s16, %s406_s25  ;;  %p411_p10 = scmp.lt.s32.totalorder %s556_s16, %s598_s2 }
 0x133   : > { %p412_p11 = scmp.lt.s32.totalorder %s410_s28, %s406_s25 }
 0x134   : > { %p408_p7 = pnand %p407_p6, %p528_p4 }
 0x135   : > { %p413_p12 = por %p412_p11, %p411_p10 }
 0x136   : > { %p409_p9 = pneg %p408_p7 }
 0x138   : > { %p414_p13 = pnand %p413_p12, %p409_p9 }
 0x13a   : > { %417 = shalt.err (!%p414_p13)
}
 0x13b   : > { %334 = dma.vmem_to_hbm [thread:$0]  (%p528_p4), %s250_s7, 128, %s556_s16, %s235_s18  }
 0x13c PF: > { %p340_p0 = scmp.ge.s32.totalorder %s468_s14, 2  ;;  %s261_s3 = sand.u32 1, %s448_s9  }
 0x13d   : > { %s262_s4 = scalar_lea.sflag [#allocation3], %s261_s3 }
 0x13e   : > { %p337_p1 = pnand %p340_p0, %p535_p8 }
 0x140   : > { %p338_p2 = pneg %p337_p1 }
 0x142   : > { %443 = dma.done.wait (%p338_p2), %s262_s4, 128  }
 0x143   : > { %445 = vsyncadd (%p338_p2), %s262_s4, 4294967168  ;;  %s15_s14 = sadd.s32 1, %s468_s14   ;;  %s601_s9 = smov %s452_s10 }
 0x144   : > { %p12_p3 = scmp.ge.s32.totalorder %s15_s14, 4   ;;  %s602_s10 = smov %s456_s11 }
 0x145   : > { %s603_s11 = smov %s541_s22  ;;  %s604_s12 = smov %s464_s13 }
 0x146   : > { %s605_s13 = smov %s607_s17  ;;  %14 = sbr.rel (!%p12_p3) target bundleno = 4 (0x4), region = 63 }
 0x14b   :  { %267 = vsyncpa [#allocation3], 1 }
 0x14c   :  { %269 = vsyncpa [#allocation3 + $0x1], 1 }

</bundles_post_ra>
